<compile_context>
chip_gen: v6e
topology: v6e:2x2x1
jax: 0.10.0
libtpu: 0.0.40
codegen_flags: <defaults>
</compile_context>

<pallas_src>
import functools
import math
import re

import jax
import jax.numpy as jnp
from jax.experimental import pallas as pl
from jax.experimental.pallas import tpu as pltpu


def _emit_output(mp, sm, wc_ref, gt_ref, o_ref, inv_hw):
    """Shared epilogue: pooled stats (b_blk, C) -> sigmoid embedding (b_blk, Cp)."""
    wc = wc_ref[...]
    membd = jnp.maximum(
        jnp.dot(mp, wc, preferred_element_type=jnp.float32), 0.0)
    # relu((sum/HW) @ Wc) == relu(sum @ Wc) / HW   (1/HW > 0) -> scale after.
    aembd = jnp.maximum(
        jnp.dot(sm, wc, preferred_element_type=jnp.float32), 0.0) * inv_hw
    out = jnp.dot(membd + aembd, gt_ref[...],
                  preferred_element_type=jnp.float32)
    o_ref[...] = jax.nn.sigmoid(out)                # (b_blk, Cp) lane-dense store


def _gcn_embd31_kernel(x_ref, wc_ref, gt_ref, o_ref, *scratch,
                       b_blk, hw, tile_hw, inv_hw, streaming, needs_mask):
    """One (batch-block, HW-tile) grid step.

    x_ref  : (b_blk, C, tile_hw)  input tile, spatial flattened on the lane axis
    wc_ref : (C, Cr)              1x1-conv weight, transposed
    gt_ref : (Cr, Cp)             precomputed gc1(A)^T, lane-padded to Cp
    o_ref  : (b_blk, Cp)          sigmoid output (lane-dense store)
    scratch: ()                   when the whole HW extent fits one block, or
             (acc_ref,)           merged (2*b_blk, C) running max/sum scratch.
    """
    if not streaming:
        # Single spatial block: reduce directly, no accumulator needed.
        x = x_ref[...]
        mp = jnp.max(x, axis=-1).astype(jnp.float32)
        sm = jnp.sum(x, axis=-1, dtype=jnp.float32)
        _emit_output(mp, sm, wc_ref, gt_ref, o_ref, inv_hw)
        return

    (acc_ref,) = scratch                     # rows [:b_blk] = max, [b_blk:] = sum
    hw_step = pl.program_id(1)
    c = acc_ref.shape[1]

    @pl.when(hw_step == 0)
    def _():
        acc_ref[:b_blk, :] = jnp.full((b_blk, c), -jnp.inf, jnp.float32)
        acc_ref[b_blk:, :] = jnp.zeros((b_blk, c), jnp.float32)

    x = x_ref[...]                                      # native dtype (f32 / bf16)
    if needs_mask:
        # Ragged last tile of the cdiv grid: mask garbage lanes (-inf / 0).
        lane = jax.lax.broadcasted_iota(jnp.int32, (1, 1, tile_hw), 2)
        valid = hw - hw_step * tile_hw                  # >= tile_hw except last step
        ok = lane < valid
        x_max = jnp.where(ok, x, -jnp.inf)
        x_sum = jnp.where(ok, x, 0.0)
    else:
        x_max = x
        x_sum = x

    acc_ref[:b_blk, :] = jnp.maximum(
        acc_ref[:b_blk, :], jnp.max(x_max, axis=-1).astype(jnp.float32))
    acc_ref[b_blk:, :] = acc_ref[b_blk:, :] + jnp.sum(
        x_sum, axis=-1, dtype=jnp.float32)

    @pl.when(hw_step == pl.num_programs(1) - 1)
    def _():
        pooled = acc_ref[...]                           # (2*b_blk, C), no concat
        _emit_output(pooled[:b_blk], pooled[b_blk:], wc_ref, gt_ref, o_ref, inv_hw)


def _tpu_generation():
    """Best-effort TPU generation (5, 6, 7, ...) from the device kind string."""
    try:
        dev = jax.devices()[0]
        if dev.platform != "tpu":
            return None
        m = re.search(r"(\d+)", getattr(dev, "device_kind", "") or "")
        return int(m.group(1)) if m else None
    except Exception:
        return None


def _choose_b_block(b, gen):
    """Batch rows per block.  Only v7x (2 TensorCores) benefits from splitting;
    blocks must be a multiple of 8 sublanes (output BlockSpec) unless == B, and
    are capped at 16 rows so the HW tile stays large under the VMEM budget."""
    candidates = [d for d in (16, 8) if b % d == 0]
    if gen is not None and gen >= 7:
        for d in candidates:
            if b // d >= 2:
                return d
        if b % 2 == 0 and (b // 2) % 8 == 0:
            return b // 2
        return b
    # v5e / v6e (single TensorCore): no split for small batches, cap big ones.
    if b <= 16 or not candidates:
        return b
    return candidates[0]


def _choose_hw_tile(b_blk, c, hw, itemsize, budget_bytes):
    """Spatial tile (lane axis).  Either the full extent (if it fits the
    per-buffer budget) or the largest multiple-of-128 tile under the budget;
    the ragged remainder is handled by a cdiv grid + in-kernel lane mask."""
    row_bytes = b_blk * c * itemsize
    if row_bytes * hw <= budget_bytes:
        return hw                                         # single full-extent block
    tile = (budget_bytes // (row_bytes * 128)) * 128
    tile = max(tile, 128)
    tile = min(tile, pl.cdiv(hw, 128) * 128)
    if tile >= hw:
        # Only reachable for hw <= 128 where even one 128-lane tile is over budget.
        # TODO(synk): split the channel axis for extreme b_blk*C at tiny HW.
        return hw
    return tile


def gcn_embd31_forward(X, A, conv1_w, gc1_w1, gc1_w2, *, tile_budget_bytes=None):
    """X: (B, C, H, W); A: (20, 20); conv1_w: (C//16, C, 1, 1);
    gc1_w1: (20, C); gc1_w2: (20, C//16).  Returns (B, C, 1, 1)."""
    B, C, H, W = X.shape
    Cr = conv1_w.shape[0]
    HW = H * W
    f32 = jnp.float32

    # Stream X in its native dtype (bf16 halves the dominant HBM term).
    x_flat = X.reshape(B, C, HW)
    wc = conv1_w.reshape(Cr, C).T.astype(f32)                          # (C, Cr)

    # gc1(A)^T = W2^T @ (A @ W1) is X-independent -> plain XLA dots, once.
    gt = gc1_w2.astype(f32).T @ (A.astype(f32) @ gc1_w1.astype(f32))   # (Cr, C)
    Cp = pl.cdiv(C, 128) * 128           # lane-pad -> unmasked lane-dense store
    gt_pad = jnp.pad(gt, ((0, 0), (0, Cp - C)))                        # (Cr, Cp)

    gen = _tpu_generation()
    is_v7 = gen is not None and gen >= 7
    b_blk = _choose_b_block(B, gen)
    itemsize = X.dtype.itemsize
    if tile_budget_bytes is None:
        # Per-buffer budget; Pallas double-buffers the X input, so the live
        # footprint is ~2x this.  v7x has only 64 MiB physical VMEM.
        tile_budget_bytes = (6 << 20) if is_v7 else (10 << 20)
    tile_hw = _choose_hw_tile(b_blk, C, HW, itemsize, tile_budget_bytes)
    streaming = tile_hw < HW
    needs_mask = streaming and (HW % tile_hw != 0)
    grid = (B // b_blk, pl.cdiv(HW, tile_hw))

    tile_bytes = b_blk * C * tile_hw * itemsize
    vmem_cap = (56 << 20) if is_v7 else (100 << 20)
    vmem_limit = int(min(vmem_cap, max(32 << 20, 2 * tile_bytes + (8 << 20))))

    kernel = functools.partial(
        _gcn_embd31_kernel, b_blk=b_blk, hw=HW, tile_hw=tile_hw,
        inv_hw=1.0 / HW, streaming=streaming, needs_mask=needs_mask)

    cost = pl.CostEstimate(
        # pooling (cmp + add per element) dominates; plus the two tiny matmuls
        flops=int(2 * B * C * HW + 2 * (2 * B) * C * Cr + 2 * B * Cr * Cp),
        transcendentals=int(B * Cp),
        bytes_accessed=int(B * C * HW * itemsize
                           + 4 * (C * Cr + Cr * Cp + B * Cp)),
    )

    scratch_shapes = ([pltpu.VMEM((2 * b_blk, C), jnp.float32)]
                      if streaming else [])

    out = pl.pallas_call(
        kernel,
        out_shape=jax.ShapeDtypeStruct((B, Cp), jnp.float32),
        grid=grid,
        in_specs=[
            pl.BlockSpec((b_blk, C, tile_hw), lambda b, h: (b, 0, h)),
            # TODO(synk): pipeline_mode=pl.Buffered(1) would avoid double-buffering
            # these two resident constants (marginal at these sizes).
            pl.BlockSpec((C, Cr), lambda b, h: (0, 0)),
            pl.BlockSpec((Cr, Cp), lambda b, h: (0, 0)),
        ],
        out_specs=pl.BlockSpec((b_blk, Cp), lambda b, h: (b, 0)),
        scratch_shapes=scratch_shapes,
        compiler_params=pltpu.CompilerParams(
            dimension_semantics=("parallel", "arbitrary"),
            vmem_limit_bytes=vmem_limit),
        cost_estimate=cost,
    )(x_flat, wc, gt_pad)

    return out[:, :C].reshape(B, C, 1, 1).astype(X.dtype)


def _reference(X, A, conv1_w, gc1_w1, gc1_w2):
    """Plain-JAX reference mirroring the PyTorch forward."""
    B, C, H, W = X.shape
    Cr = conv1_w.shape[0]
    mp = jnp.max(X.reshape(B, C, -1), axis=-1)
    ap = jnp.mean(X.reshape(B, C, -1), axis=-1)
    wc = conv1_w.reshape(Cr, C)
    membd = jax.nn.relu(mp @ wc.T)
    aembd = jax.nn.relu(ap @ wc.T)
    support = A @ gc1_w1                # (20, C)
    g = support.T @ gc1_w2              # (C, Cr)
    out = jax.nn.sigmoid(membd @ g.T + aembd @ g.T)
    return out.reshape(B, C, 1, 1)


if __name__ == "__main__":
    # Shapes consistent with the module: in_channel=64 (so C//16=4), the
    # AGCN1 graph branch hard-codes the 20-node adjacency, B=2.
    in_channel = 64
    B, H, W = 2, 16, 16
    Cr = in_channel // 16

    key = jax.random.PRNGKey(0)
    kx, ka, kc, k1, k2, kx2 = jax.random.split(key, 6)

    A = jax.random.normal(ka, (20, 20), dtype=jnp.float32)
    k_conv = 1.0 / math.sqrt(in_channel)
    conv1_w = jax.random.uniform(kc, (Cr, in_channel, 1, 1),
                                 minval=-k_conv, maxval=k_conv, dtype=jnp.float32)
    stdv1 = 1.0 / math.sqrt(in_channel)
    gc1_w1 = jax.random.uniform(k1, (20, in_channel),
                                minval=-stdv1, maxval=stdv1, dtype=jnp.float32)
    stdv2 = 1.0 / math.sqrt(Cr)
    gc1_w2 = jax.random.uniform(k2, (20, Cr),
                                minval=-stdv2, maxval=stdv2, dtype=jnp.float32)

    # 1) Single-block path (whole spatial extent fits the VMEM budget).
    X = jax.random.normal(kx, (B, in_channel, H, W), dtype=jnp.float32)
    y = jax.block_until_ready(gcn_embd31_forward(X, A, conv1_w, gc1_w1, gc1_w2))
    y_ref = _reference(X, A, conv1_w, gc1_w1, gc1_w2)
    assert y.shape == (B, in_channel, 1, 1)
    assert jnp.allclose(y, y_ref, atol=1e-5, rtol=1e-5)

    # 2) Streaming path with a ragged (lane-masked) last spatial tile:
    #    HW = 200 is not a multiple of 128 and a tiny budget forces 128-lane
    #    tiles on a cdiv grid (exercises the hardened fallback-free tiling).
    X2 = jax.random.normal(kx2, (B, in_channel, 10, 20), dtype=jnp.float32)
    y2 = jax.block_until_ready(
        gcn_embd31_forward(X2, A, conv1_w, gc1_w1, gc1_w2,
                           tile_budget_bytes=96 * 1024))
    y2_ref = _reference(X2, A, conv1_w, gc1_w1, gc1_w2)
    assert jnp.allclose(y2, y2_ref, atol=1e-5, rtol=1e-5)

    print("KERNEL_OK")
</pallas_src>

<mosaic_0001>
module attributes {stable_mosaic.version = 11 : i64} {
  func.func @_gcn_embd31_kernel(%arg0: i32, %arg1: i32, %arg2: memref<2x64x256xf32, #tpu.memory_space<vmem>>, %arg3: memref<64x4xf32, #tpu.memory_space<vmem>>, %arg4: memref<4x128xf32, #tpu.memory_space<vmem>>, %arg5: memref<2x128xf32, #tpu.memory_space<vmem>>) attributes {dimension_semantics = [#tpu.dimension_semantics<parallel>, #tpu.dimension_semantics<arbitrary>], iteration_bounds = array<i64: 1, 1>, scalar_prefetch = 0 : i64, scratch_operands = 0 : i64, tpu.core_type = #tpu.core_type<tc>, window_params = [{transform_indices = @transform_0, window_bounds = array<i64: 2, 64, 256>}, {pipeline_mode = #tpu.pipeline_mode<synchronous>, transform_indices = @transform_1, window_bounds = array<i64: 64, 4>}, {pipeline_mode = #tpu.pipeline_mode<synchronous>, transform_indices = @transform_2, window_bounds = array<i64: 4, 128>}, {transform_indices = @transform_3, window_bounds = array<i64: 2, 128>}]} {
    %c0 = arith.constant 0 : index
    %c0_0 = arith.constant 0 : index
    %c0_1 = arith.constant 0 : index
    %0 = vector.load %arg2[%c0, %c0_0, %c0_1] : memref<2x64x256xf32, #tpu.memory_space<vmem>>, vector<2x64x256xf32>
    %cst = arith.constant dense<0xFF800000> : vector<2x64xf32>
    %1 = vector.multi_reduction <maximumf>, %0, %cst [2] : vector<2x64x256xf32> to vector<2x64xf32>
    %cst_2 = arith.constant dense<0.000000e+00> : vector<2x64xf32>
    %2 = vector.multi_reduction <add>, %0, %cst_2 [2] : vector<2x64x256xf32> to vector<2x64xf32>
    %c0_3 = arith.constant 0 : index
    %c0_4 = arith.constant 0 : index
    %3 = vector.load %arg3[%c0_3, %c0_4] : memref<64x4xf32, #tpu.memory_space<vmem>>, vector<64x4xf32>
    %cst_5 = arith.constant dense<0.000000e+00> : vector<2x4xf32>
    %4 = tpu.matmul %1, %3, %cst_5 {dimension_numbers = #tpu.dot_dimension_numbers<[1], [0], [0], [1], [0, 0, 1, 1], [], []>} : vector<2x64xf32>, vector<64x4xf32>, vector<2x4xf32> -> vector<2x4xf32>
    %cst_6 = arith.constant 0.000000e+00 : f32
    %5 = vector.broadcast %cst_6 : f32 to vector<2x4xf32>
    %6 = arith.maximumf %4, %5 : vector<2x4xf32>
    %cst_7 = arith.constant dense<0.000000e+00> : vector<2x4xf32>
    %7 = tpu.matmul %2, %3, %cst_7 {dimension_numbers = #tpu.dot_dimension_numbers<[1], [0], [0], [1], [0, 0, 1, 1], [], []>} : vector<2x64xf32>, vector<64x4xf32>, vector<2x4xf32> -> vector<2x4xf32>
    %cst_8 = arith.constant 0.000000e+00 : f32
    %8 = vector.broadcast %cst_8 : f32 to vector<2x4xf32>
    %9 = arith.maximumf %7, %8 : vector<2x4xf32>
    %cst_9 = arith.constant 3.906250e-03 : f32
    %10 = vector.broadcast %cst_9 : f32 to vector<2x4xf32>
    %11 = arith.mulf %9, %10 : vector<2x4xf32>
    %12 = arith.addf %6, %11 : vector<2x4xf32>
    %c0_10 = arith.constant 0 : index
    %c0_11 = arith.constant 0 : index
    %13 = vector.load %arg4[%c0_10, %c0_11] : memref<4x128xf32, #tpu.memory_space<vmem>>, vector<4x128xf32>
    %cst_12 = arith.constant dense<0.000000e+00> : vector<2x128xf32>
    %14 = tpu.matmul %12, %13, %cst_12 {dimension_numbers = #tpu.dot_dimension_numbers<[1], [0], [0], [1], [0, 0, 1, 1], [], []>} : vector<2x4xf32>, vector<4x128xf32>, vector<2x128xf32> -> vector<2x128xf32>
    %15 = arith.negf %14 : vector<2x128xf32>
    %16 = math.exp %15 : vector<2x128xf32>
    %cst_13 = arith.constant 1.000000e+00 : f32
    %17 = vector.broadcast %cst_13 : f32 to vector<2x128xf32>
    %18 = arith.addf %17, %16 : vector<2x128xf32>
    %19 = arith.divf %17, %18 : vector<2x128xf32>
    %c0_14 = arith.constant 0 : index
    %c0_15 = arith.constant 0 : index
    %20 = vector.load %arg5[%c0_14, %c0_15] : memref<2x128xf32, #tpu.memory_space<vmem>>, vector<2x128xf32>
    tpu.vector_store %arg5[%c0_14, %c0_15], %19 {strides = array<i32>} : memref<2x128xf32, #tpu.memory_space<vmem>>, vector<2x128xf32>,
    return
  }
  func.func @transform_0(%arg0: i32, %arg1: i32) -> (i32, i32, i32) {
    %c0_i32 = arith.constant 0 : i32
    %c0_i32_0 = arith.constant 0 : i32
    return %arg0, %c0_i32, %arg1 : i32, i32, i32
  }
  func.func @transform_1(%arg0: i32, %arg1: i32) -> (i32, i32) {
    %c0_i32 = arith.constant 0 : i32
    %c0_i32_0 = arith.constant 0 : i32
    %c0_i32_1 = arith.constant 0 : i32
    return %c0_i32, %c0_i32_0 : i32, i32
  }
  func.func @transform_2(%arg0: i32, %arg1: i32) -> (i32, i32) {
    %c0_i32 = arith.constant 0 : i32
    %c0_i32_0 = arith.constant 0 : i32
    %c0_i32_1 = arith.constant 0 : i32
    return %c0_i32, %c0_i32_0 : i32, i32
  }
  func.func @transform_3(%arg0: i32, %arg1: i32) -> (i32, i32) {
    %c0_i32 = arith.constant 0 : i32
    %c0_i32_0 = arith.constant 0 : i32
    return %arg0, %c0_i32 : i32, i32
  }
}

</mosaic_0001>

<bundles_post_ra>
// kernel: tpu_custom_call.1
= control target key start
LH: loop header
LB: loop body
LE: loop exit
PB: predicated region body
PF: predicated region fallthrough
CT: control target
= control target key end

     0   :  { %8 = vsyncpa [#allocation3], 0  ;;  %s963_s0 = inlined_call_operand.hbm [shape: f32[2,64,256], index: 0, kind: input, shape index: {}]   ;;  %s964_s1 = inlined_call_operand.vmem [shape: f32[64,4], index: 1, kind: input, shape index: {}]   ;;  %s965_s2 = inlined_call_operand.vmem [shape: f32[4,128], index: 2, kind: input, shape index: {}]   ;;  %s966_s3 = inlined_call_operand.hbm [shape: f32[2,128], index: 3, kind: output, shape index: {}]  }
   0x1   :  { %9 = vsyncpa [#allocation4], 0  ;;  %s744_s12 = smov [#allocation2]  }
   0x2   :  { %s15_s13 = sshll.u32 %s744_s12, 4  ;;  %s16_s13 = int_to_ptr.vmem [resolvable:$true] %s15_s13 }
   0x3   :  { %s708_s14 = scalar_lea.vmem %s16_s13, 4096  ;;  %p713_p1 = scmp.lt.s32.totalorder %s16_s13, %s16_s13 }
   0x4   :  { %p709_p0 = scmp.ne.s32.totalorder %s16_s13, %s708_s14  ;;  %p714_p2 = scmp.lt.s32.totalorder %s708_s14, %s708_s14 }
   0x6   :  { %p715_p3 = por %p714_p2, %p713_p1 }
   0x8   :  { %p716_p4 = pnand %p715_p3, %p709_p0 }
   0xa   :  { %719 = shalt.err (!%p716_p4)
}
   0xb   :  { %s745_s15 = smov 256   ;;  %s746_s16 = smov 16  }
   0xc   :  { %21 = dma.hbm_to_vmem [thread:$0]  %s963_s0, 4096, %s16_s13, [#allocation3], %s745_s15, %s745_s15, %s746_s16  }
   0xd   :  { %740 = dma.done.wait [#allocation3], 4096  }
   0xe   :  { %741 = vsyncadd [#allocation3], 4294963200  ;;  %v45_v0 = vld [vmem:[#allocation2 + $0x80] sm:$0xff]  ;;  %v46_v1 = vld [vmem:[#allocation2 + $0x88] sm:$0xff]  ;;  %v747_v60 = vmov 0.0   ;;  %vm748_vm0 = vmmov 0  }
   0xf   :  { %v29_v2 = vld [vmem:[#allocation2] sm:$0xff]  ;;  %v133_v3 = vadd.f32 %v46_v1, %v45_v0  ;;  %v30_v4 = vld [vmem:[#allocation2 + $0x8] sm:$0xff]  ;;  %v47_v5 = vld [vmem:[#allocation2 + $0x90] sm:$0xff]  ;;  %v85_v21 = vmax.f32 %v45_v0, %v46_v1  ;;  %666 = vmatprep.subr.mxu1 %v747_v60  ;;  %647 = vmatprep.subr.mxu0 %v747_v60  ;;  %vm192_vm1 = vcmask 130112   ;;  %vm199_vm2 = vcmask 195712  }
  0x10   :  { %v48_v6 = vld [vmem:[#allocation2 + $0x98] sm:$0xff]  ;;  %v109_v7 = vadd.f32 %v30_v4, %v29_v2  ;;  %v31_v8 = vld [vmem:[#allocation2 + $0x10] sm:$0xff]  ;;  %v49_v12 = vld [vmem:[#allocation2 + $0xa0] sm:$0xff]  ;;  %v61_v19 = vmax.f32 %v29_v2, %v30_v4  ;;  %682 = vmatprep.mubr.msk.f32.mxu1 %vm748_vm0, %v747_v60  ;;  %663 = vmatprep.mubr.msk.f32.mxu0 %vm748_vm0, %v747_v60  ;;  %vm206_vm3 = vcmask 261312   ;;  %vm213_vm4 = vcmask 326912  }
  0x11   :  { %v32_v9 = vld [vmem:[#allocation2 + $0x18] sm:$0xff]  ;;  %134 = vadd.xlane.f32.xlu1 %v133_v3  ;;  %v136_v10 = vadd.f32 %v48_v6, %v47_v5  ;;  %v50_v13 = vld [vmem:[#allocation2 + $0xa8] sm:$0xff]  ;;  %v33_v14 = vld [vmem:[#allocation2 + $0x20] sm:$0xff]  ;;  %v88_v20 = vmax.f32 %v47_v5, %v48_v6  ;;  %vm220_vm5 = vcmask 392512   ;;  %vm227_vm6 = vcmask 458112  }
  0x12   :  { %110 = vadd.xlane.f32.xlu0 %v109_v7  ;;  %v112_v11 = vadd.f32 %v32_v9, %v31_v8  ;;  %v34_v15 = vld [vmem:[#allocation2 + $0x28] sm:$0xff]  ;;  %v139_v16 = vadd.f32 %v50_v13, %v49_v12  ;;  %v64_v18 = vmax.f32 %v31_v8, %v32_v9  ;;  %v51_v22 = vld [vmem:[#allocation2 + $0xb0] sm:$0xff]  ;;  %v52_v23 = vld [vmem:[#allocation2 + $0xb8] sm:$0xff]  ;;  %v91_v28 = vmax.f32 %v49_v12, %v50_v13 }
  0x13   :  { %v115_v17 = vadd.f32 %v34_v15, %v33_v14  ;;  %v35_v24 = vld [vmem:[#allocation2 + $0x30] sm:$0xff]  ;;  %v36_v25 = vld [vmem:[#allocation2 + $0x38] sm:$0xff]  ;;  %v142_v26 = vadd.f32 %v52_v23, %v51_v22  ;;  %v67_v29 = vmax.f32 %v33_v14, %v34_v15  ;;  %v53_v30 = vld [vmem:[#allocation2 + $0xc0] sm:$0xff]  ;;  %v94_v36 = vmax.f32 %v51_v22, %v52_v23 }
  0x14   :  { %v118_v27 = vadd.f32 %v36_v25, %v35_v24  ;;  %v54_v31 = vld [vmem:[#allocation2 + $0xc8] sm:$0xff]  ;;  %v37_v32 = vld [vmem:[#allocation2 + $0x40] sm:$0xff]  ;;  %v70_v37 = vmax.f32 %v35_v24, %v36_v25  ;;  %v55_v38 = vld [vmem:[#allocation2 + $0xd0] sm:$0xff]  ;;  %v181_v25 = vlaneseq  ;;  %vm234_vm7 = vcmask 523712  }
  0x15   :  { %137 = vadd.xlane.f32.xlu1 %v136_v10  ;;  %v38_v33 = vld [vmem:[#allocation2 + $0x48] sm:$0xff]  ;;  %v145_v34 = vadd.f32 %v54_v31, %v53_v30  ;;  %v56_v39 = vld [vmem:[#allocation2 + $0xd8] sm:$0xff]  ;;  %v39_v40 = vld [vmem:[#allocation2 + $0x50] sm:$0xff]  ;;  %v97_v44 = vmax.f32 %v53_v30, %v54_v31  ;;  %vm275_vm8 = vcmask 1041409   ;;  %vm277_vm9 = vcmask 523264  }
  0x16   :  { %113 = vadd.xlane.f32.xlu0 %v112_v11  ;;  %v121_v35 = vadd.f32 %v38_v33, %v37_v32  ;;  %v40_v41 = vld [vmem:[#allocation2 + $0x58] sm:$0xff]  ;;  %v148_v42 = vadd.f32 %v56_v39, %v55_v38  ;;  %v73_v45 = vmax.f32 %v37_v32, %v38_v33  ;;  %v57_v46 = vld [vmem:[#allocation2 + $0xe0] sm:$0xff]  ;;  %v58_v47 = vld [vmem:[#allocation2 + $0xe8] sm:$0xff]  ;;  %v100_v52 = vmax.f32 %v55_v38, %v56_v39 }
  0x17   :  { %v124_v43 = vadd.f32 %v40_v41, %v39_v40  ;;  %v41_v48 = vld [vmem:[#allocation2 + $0x60] sm:$0xff]  ;;  %v42_v49 = vld [vmem:[#allocation2 + $0x68] sm:$0xff]  ;;  %v151_v50 = vadd.f32 %v58_v47, %v57_v46  ;;  %v76_v53 = vmax.f32 %v39_v40, %v40_v41  ;;  %v59_v54 = vld [vmem:[#allocation2 + $0xf0] sm:$0xff]  ;;  %v103_v62 = vmax.f32 %v57_v46, %v58_v47 }
  0x18   :  { %v127_v51 = vadd.f32 %v42_v49, %v41_v48  ;;  %v60_v55 = vld [vmem:[#allocation2 + $0xf8] sm:$0xff]  ;;  %v43_v56 = vld [vmem:[#allocation2 + $0x70] sm:$0xff]  ;;  %v79_v63 = vmax.f32 %v41_v48, %v42_v49  ;;  %v162_v1 = vld [vmem:[%s964_s1 + $0x28] sm:$0xff]  ;;  %v184_v33 = vshrl.u32 %v181_v25, 7  ;;  %vm526_vm10 = vcmask 1043456  }
  0x19   :  { %140 = vadd.xlane.f32.xlu1 %v139_v16  ;;  %v44_v57 = vld [vmem:[#allocation2 + $0x78] sm:$0xff]  ;;  %v154_v58 = vadd.f32 %v60_v55, %v59_v54  ;;  %v163_v0 = vld [vmem:[%s964_s1 + $0x30] sm:$0xff]  ;;  %v106_v2 = vmax.f32 %v59_v54, %v60_v55  ;;  %v161_v4 = vld [vmem:[%s964_s1 + $0x20] sm:$0xff]  ;;  %vm522_vm11 = vcmask 31744  }
  0x1a   :  { %116 = vadd.xlane.f32.xlu0 %v115_v17  ;;  %v130_v59 = vadd.f32 %v44_v57, %v43_v56  ;;  %v164_v61 = vld [vmem:[%s964_s1 + $0x38] sm:$0xff]  ;;  %v82_v3 = vmax.f32 %v43_v56, %v44_v57  ;;  %v159_v6 = vld [vmem:[%s964_s1 + $0x10] sm:$0xff]  ;;  %v158_v7 = vld [vmem:[%s964_s1 + $0x8] sm:$0xff] }
  0x1b   :  { %667 = vmatpush3.msra.mxu1 %v164_v61  ;;  %648 = vmatpush3.msra.mxu0 %v164_v61  ;;  %v160_v5 = vld [vmem:[%s964_s1 + $0x18] sm:$0xff]  ;;  %v157_v8 = vld [vmem:[%s964_s1] sm:$0xff] }
  0x1c   :  { %668 = vmatprep.subr.mxu1 %v747_v60  ;;  %649 = vmatprep.subr.mxu0 %v747_v60 }
  0x1d   :  { %65 = vmax.xlane.f32.xlu1 %v64_v18  ;;  %669 = vmatpush3.msra.mxu1 %v163_v0 }
  0x1e   :  { %62 = vmax.xlane.f32.xlu0 %v61_v19  ;;  %670 = vmatprep.subr.mxu1 %v747_v60 }
  0x1f   :  { %671 = vmatpush3.msra.mxu1 %v162_v1  ;;  %650 = vmatpush3.msra.mxu0 %v163_v0 }
  0x20   :  { %672 = vmatprep.subr.mxu1 %v747_v60  ;;  %651 = vmatprep.subr.mxu0 %v747_v60 }
  0x21   :  { %89 = vmax.xlane.f32.xlu1 %v88_v20  ;;  %673 = vmatpush3.msra.mxu1 %v161_v4 }
  0x22   :  { %86 = vmax.xlane.f32.xlu0 %v85_v21  ;;  %674 = vmatprep.subr.mxu1 %v747_v60 }
  0x23   :  { %675 = vmatpush3.msra.mxu1 %v160_v5  ;;  %652 = vmatpush3.msra.mxu0 %v162_v1 }
  0x24   :  { %676 = vmatprep.subr.mxu1 %v747_v60  ;;  %653 = vmatprep.subr.mxu0 %v747_v60 }
  0x25   :  { %143 = vadd.xlane.f32.xlu1 %v142_v26  ;;  %677 = vmatpush3.msra.mxu1 %v159_v6 }
  0x26   :  { %119 = vadd.xlane.f32.xlu0 %v118_v27  ;;  %678 = vmatprep.subr.mxu1 %v747_v60 }
  0x27   :  { %679 = vmatpush3.msra.mxu1 %v158_v7  ;;  %654 = vmatpush3.msra.mxu0 %v161_v4 }
  0x28   :  { %680 = vmatprep.subr.mxu1 %v747_v60  ;;  %655 = vmatprep.subr.mxu0 %v747_v60 }
  0x29   :  { %92 = vmax.xlane.f32.xlu1 %v91_v28  ;;  %681 = vmatpush3.msra.mxu1 %v157_v8  ;;  %v182_v28 = vand.u32 127, %v181_v25 }
  0x2a   :  { %68 = vmax.xlane.f32.xlu0 %v67_v29  ;;  %656 = vmatpush3.msra.mxu0 %v160_v5 }
  0x2b   :  { %657 = vmatprep.subr.mxu0 %v747_v60  ;;  %v187_v30 = vadd.s32 4294967288, %v182_v28  ;;  %v194_v32 = vadd.s32 4294967280, %v182_v28  ;;  %v215_v38 = vadd.s32 4294967256, %v182_v28  ;;  %v222_v40 = vadd.s32 4294967248, %v182_v28 }
  0x2c   :  { %658 = vmatpush3.msra.mxu0 %v159_v6 }
  0x2d   :  { %146 = vadd.xlane.f32.xlu1 %v145_v34  ;;  %659 = vmatprep.subr.mxu0 %v747_v60  ;;  %v201_v34 = vadd.s32 4294967272, %v182_v28  ;;  %v858_v41 = vsub.s32 %v194_v32, %v184_v33  ;;  %v867_v48 = vsub.s32 %v215_v38, %v184_v33  ;;  %v869_v49 = vsub.s32 %v222_v40, %v184_v33 }
  0x2e   :  { %122 = vadd.xlane.f32.xlu0 %v121_v35  ;;  %660 = vmatpush3.msra.mxu0 %v158_v7  ;;  %v208_v35 = vadd.s32 4294967264, %v182_v28 }
  0x2f   :  { %661 = vmatprep.subr.mxu0 %v747_v60 }
  0x30   :  { %662 = vmatpush3.msra.mxu0 %v157_v8 }
  0x31   :  { %95 = vmax.xlane.f32.xlu1 %v94_v36  ;;  %685 = vmatprep.subr.mxu0 %v747_v60 }
  0x32   :  { %71 = vmax.xlane.f32.xlu0 %v70_v37  ;;  %v854_v37 = vsub.s32 %v187_v30, %v184_v33 }
  0x35   :  { %149 = vadd.xlane.f32.xlu1 %v148_v42  ;;  %v229_v42 = vadd.s32 4294967240, %v182_v28 }
  0x36   :  { %125 = vadd.xlane.f32.xlu0 %v124_v43  ;;  %v860_v43 = vsub.s32 %v182_v28, %v184_v33 }
  0x39   :  { %98 = vmax.xlane.f32.xlu1 %v97_v44  ;;  %v862_v44 = vsub.s32 %v201_v34, %v184_v33 }
  0x3a   :  { %74 = vmax.xlane.f32.xlu0 %v73_v45  ;;  %v864_v45 = vsub.s32 %v208_v35, %v184_v33 }
  0x3d   :  { %152 = vadd.xlane.f32.xlu1 %v151_v50 }
  0x3e   :  { %128 = vadd.xlane.f32.xlu0 %v127_v51 }
  0x41   :  { %101 = vmax.xlane.f32.xlu1 %v100_v52 }
  0x42   :  { %77 = vmax.xlane.f32.xlu0 %v76_v53  ;;  %v875_v53 = vsub.s32 %v229_v42, %v184_v33 }
  0x45   :  { %155 = vadd.xlane.f32.xlu1 %v154_v58 }
  0x46   :  { %131 = vadd.xlane.f32.xlu0 %v130_v59 }
  0x49   :  { %104 = vmax.xlane.f32.xlu1 %v103_v62 }
  0x4a   :  { %80 = vmax.xlane.f32.xlu0 %v79_v63 }
  0x4d   :  { %107 = vmax.xlane.f32.xlu1 %v106_v2 }
  0x4e   :  { %83 = vmax.xlane.f32.xlu0 %v82_v3 }
  0x9a   :  { %v135_v9 = vpop.xlane.xlu1 %134 }
  0x9b   :  { %v818_v10 = vpop.xlane.xlu0 %110  ;;  %v409_v54 = vrot.slane %v135_v9, %v860_v43 }
  0x9c   :  { %v370_v57 = vrot.slane %v818_v10, %v860_v43 }
  0x9e   :  { %v138_v11 = vpop.xlane.xlu1 %137 }
  0x9f   :  { %v820_v12 = vpop.xlane.xlu0 %113  ;;  %v413_v47 = vrot.slane %v138_v11, %v854_v37 }
  0xa0   :  { %v374_v51 = vrot.slane %v820_v12, %v854_v37 }
  0xa1   :  { %v414_v62 = vsel %vm192_vm1, %v413_v47, %v409_v54 }
  0xa2   :  { %v822_v13 = vpop.xlane.xlu1 %140  ;;  %v375_v2 = vsel %vm192_vm1, %v374_v51, %v370_v57 }
  0xa3   :  { %v824_v14 = vpop.xlane.xlu0 %116  ;;  %v418_v52 = vrot.slane %v822_v13, %v858_v41 }
  0xa4   :  { %v379_v55 = vrot.slane %v824_v14, %v858_v41 }
  0xa5   :  { %v419_v3 = vsel %vm199_vm2, %v418_v52, %v414_v62 }
  0xa6   :  { %v826_v15 = vpop.xlane.xlu1 %65  ;;  %v380_v6 = vsel %vm199_vm2, %v379_v55, %v375_v2 }
  0xa7   :  { %v828_v16 = vpop.xlane.xlu0 %62  ;;  %v191_v7 = vrot.slane %v826_v15, %v854_v37 }
  0xa8   :  { %v186_v10 = vrot.slane %v828_v16, %v860_v43 }
  0xaa   :  { %v830_v17 = vpop.xlane.xlu1 %89  ;;  %v193_v40 = vsel %vm192_vm1, %v191_v7, %v186_v10 }
  0xab   :  { %v832_v18 = vpop.xlane.xlu0 %86  ;;  %v243_v11 = vrot.slane %v830_v17, %v854_v37 }
  0xae   :  { %v834_v19 = vpop.xlane.xlu1 %143 }
  0xaf   :  { %v836_v20 = vpop.xlane.xlu0 %119  ;;  %v423_v56 = vrot.slane %v834_v19, %v862_v44  ;;  %v239_v19 = vrot.slane %v832_v18, %v860_v43 }
  0xb0   :  { %v384_v58 = vrot.slane %v836_v20, %v862_v44 }
  0xb1   :  { %v424_v8 = vsel %vm206_vm3, %v423_v56, %v419_v3  ;;  %v244_v35 = vsel %vm192_vm1, %v243_v11, %v239_v19 }
  0xb2   :  { %v838_v21 = vpop.xlane.xlu1 %92  ;;  %v385_v12 = vsel %vm206_vm3, %v384_v58, %v380_v6 }
  0xb3   :  { %v840_v22 = vpop.xlane.xlu0 %68  ;;  %v248_v16 = vrot.slane %v838_v21, %v858_v41 }
  0xb6   :  { %v842_v23 = vpop.xlane.xlu1 %146 }
  0xb7   :  { %v844_v24 = vpop.xlane.xlu0 %122  ;;  %v428_v59 = vrot.slane %v842_v23, %v864_v45 }
  0xb8   :  { %v389_v63 = vrot.slane %v844_v24, %v864_v45 }
  0xb9   :  { %v429_v13 = vsel %vm213_vm4, %v428_v59, %v424_v8  ;;  %v521_v59 = vld [vmem:[%s965_s2] sm:$0xf]  ;;  %s749_s2 = smov [#allocation5]  }
  0xba   :  { %v846_v26 = vpop.xlane.xlu1 %95  ;;  %v390_v15 = vsel %vm213_vm4, %v389_v63, %v385_v12  ;;  %s613_s8 = sshll.u32 %s749_s2, 4  ;;  %s614_s8 = int_to_ptr.vmem [resolvable:$true] %s613_s8 }
  0xbb   :  { %v848_v27 = vpop.xlane.xlu0 %71  ;;  %v253_v18 = vrot.slane %v846_v26, %v862_v44  ;;  %s720_s9 = scalar_lea.vmem %s614_s8, 32  ;;  %p725_p6 = scmp.lt.s32.totalorder %s614_s8, %s614_s8 }
  0xbc   :  { %v205_v32 = vrot.slane %v848_v27, %v862_v44  ;;  %v249_v27 = vsel %vm199_vm2, %v248_v16, %v244_v35  ;;  %p721_p5 = scmp.ne.s32.totalorder %s614_s8, %s720_s9  ;;  %p726_p7 = scmp.lt.s32.totalorder %s720_s9, %s720_s9 }
  0xbd   :  { %v254_v43 = vsel %vm206_vm3, %v253_v18, %v249_v27 }
  0xbe   :  { %v150_v29 = vpop.xlane.xlu1 %149  ;;  %p727_p8 = por %p726_p7, %p725_p6 }
  0xbf   :  { %v850_v31 = vpop.xlane.xlu0 %125  ;;  %v433_v0 = vrot.slane %v150_v29, %v867_v48  ;;  %v198_v29 = vrot.slane %v840_v22, %v858_v41 }
  0xc0   :  { %v394_v4 = vrot.slane %v850_v31, %v867_v48  ;;  %p728_p9 = pnand %p727_p8, %p721_p5 }
  0xc1   :  { %v434_v20 = vsel %vm220_vm5, %v433_v0, %v429_v13  ;;  %v200_v42 = vsel %vm199_vm2, %v198_v29, %v193_v40 }
  0xc2   :  { %v852_v36 = vpop.xlane.xlu1 %98  ;;  %v395_v17 = vsel %vm220_vm5, %v394_v4, %v390_v15  ;;  %v207_v44 = vsel %vm206_vm3, %v205_v32, %v200_v42 }
  0xc3   :  { %v856_v39 = vpop.xlane.xlu0 %74  ;;  %v258_v21 = vrot.slane %v852_v36, %v864_v45 }
  0xc4   :  { %v212_v22 = vrot.slane %v856_v39, %v864_v45 }
  0xc5   :  { %v259_v45 = vsel %vm213_vm4, %v258_v21, %v254_v43 }
  0xc6   :  { %v153_v46 = vpop.xlane.xlu1 %152  ;;  %v214_v47 = vsel %vm213_vm4, %v212_v22, %v207_v44 }
  0xc7   :  { %v129_v50 = vpop.xlane.xlu0 %128  ;;  %v438_v5 = vrot.slane %v153_v46, %v869_v49 }
  0xc8   :  { %v399_v9 = vrot.slane %v129_v50, %v869_v49 }
  0xc9   :  { %v439_v25 = vsel %vm227_vm6, %v438_v5, %v434_v20 }
  0xca   :  { %v102_v61 = vpop.xlane.xlu1 %101  ;;  %v400_v30 = vsel %vm227_vm6, %v399_v9, %v395_v17 }
  0xcb   :  { %v78_v1 = vpop.xlane.xlu0 %77  ;;  %v263_v26 = vrot.slane %v102_v61, %v867_v48 }
  0xcc   :  { %v219_v41 = vrot.slane %v78_v1, %v867_v48 }
  0xcd   :  { %v264_v50 = vsel %vm220_vm5, %v263_v26, %v259_v45 }
  0xce   :  { %v156_v14 = vpop.xlane.xlu1 %155  ;;  %v221_v52 = vsel %vm220_vm5, %v219_v41, %v214_v47 }
  0xcf   :  { %v443_v23 = vrot.slane %v156_v14, %v875_v53  ;;  %v132_v24 = vpop.xlane.xlu0 %131 }
  0xd0   :  { %v404_v28 = vrot.slane %v132_v24, %v875_v53 }
  0xd1   :  { %v444_v31 = vsel %vm234_vm7, %v443_v23, %v439_v25 }
  0xd2   :  { %v405_v33 = vsel %vm234_vm7, %v404_v28, %v400_v30  ;;  %v105_v34 = vpop.xlane.xlu1 %104 }
  0xd3   :  { %v81_v37 = vpop.xlane.xlu0 %80  ;;  %v445_v38 = vsel %vm275_vm8, %v444_v31, %v405_v33  ;;  %v268_v36 = vrot.slane %v105_v34, %v869_v49 }
  0xd4   :  { %683 = vmatmul.mubr.msk.f32.vlgmr.msra.gmra.mxu1 %vm277_vm9, %v445_v38  ;;  %v226_v39 = vrot.slane %v81_v37, %v869_v49 }
  0xd5   :  { %v269_v54 = vsel %vm227_vm6, %v268_v36, %v264_v50 }
  0xd6   :  { %v108_v46 = vpop.xlane.xlu1 %107  ;;  %v228_v49 = vsel %vm227_vm6, %v226_v39, %v221_v52 }
  0xd7   :  { %v273_v48 = vrot.slane %v108_v46, %v875_v53  ;;  %v84_v51 = vpop.xlane.xlu0 %83 }
  0xd8   :  { %v233_v55 = vrot.slane %v84_v51, %v875_v53 }
  0xd9   :  { %v274_v56 = vsel %vm234_vm7, %v273_v48, %v269_v54 }
  0xda   :  { %v235_v57 = vsel %vm234_vm7, %v233_v55, %v228_v49 }
  0xdb   :  { %v276_v58 = vsel %vm275_vm8, %v274_v56, %v235_v57 }
  0xdc   :  { %664 = vmatmul.mubr.msk.f32.vlgmr.msra.gmra.mxu0 %vm277_vm9, %v276_v58 }
  0xdd   :  { %687 = vmatprep.mubr.msk.f32.mxu0 %vm748_vm0, %v747_v60  ;;  %686 = vmatpush3.msk.msra.mxu0 %vm526_vm10, %v521_v59 }
 0x194   :  { %v514_v53 = vpop.f32.mrf.mxu1 }
 0x195   :  { %v518_v62 = vmax.f32 %v514_v53, 0.0 }
 0x196   :  { %v684_v61 = vpop.f32.mrf.mxu1 }
 0x197   :  { %v519_v0 = vmul.f32 0.00390625, %v518_v62 }
 0x19c   :  { %v346_v63 = vpop.f32.mrf.mxu0 }
 0x19d   :  { %v350_v1 = vmax.f32 %v346_v63, 0.0 }
 0x19e   :  { %v665_v2 = vpop.f32.mrf.mxu0 }
 0x19f   :  { %v520_v3 = vadd.f32 %v519_v0, %v350_v1 }
 0x1a1   :  { %688 = vmatmul.mubr.msk.f32.vlgmr.msra.gmra.mxu0 %vm522_vm11, %v520_v3 }
 0x261   :  { %v596_v4 = vpop.f32.mrf.mxu0 }
 0x262   :  { %v626_v5 = vmul.f32 -1.442695, %v596_v4 }
 0x263   :  { %v689_v6 = vpop.f32.mrf.mxu0 }
 0x264   :  { %696 = vpow2.f32 %v626_v5 }
 0x271   :  { %v697_v60 = vpop.eup %696 }
 0x272   :  { %v603_v7 = vadd.f32 1.0, %v697_v60 }
 0x274   :  { %698 = vrcp.f32 %v603_v7 }
 0x281   :  { %v699_v8 = vpop.eup %698 }
 0x282   :  { %606 = vst [vmem:[#allocation5] sm:$0x3] %v699_v8 }
 0x283   :  { %731 = shalt.err (!%p728_p9)
}
 0x284   :  { %616 = dma.vmem_to_hbm [thread:$0]  %s614_s8, 32, %s966_s3, [#allocation4]  }
 0x285   :  { %742 = dma.done.wait [#allocation4], 32  }
 0x286   :  { %743 = vsyncadd [#allocation4], 4294967264 }
 0x287   :  { %620 = vsyncpa [#allocation3], 1 }
 0x288   :  { %621 = vsyncpa [#allocation4], 1 }

</bundles_post_ra>
